<compile_context>
chip_gen: v5e
topology: v5e:2x2
jax: 0.10.0
libtpu: 0.0.40
codegen_flags: <defaults>
</compile_context>

<pallas_src>
import jax
import jax.numpy as jnp
from jax.experimental import pallas as pl
from jax.experimental.pallas import tpu as pltpu

_LANE = 128
_NEG_BIG = -1e30  # padded-class bias: exp() underflows to exactly 0 in f32


# ----------------------------------------------------------------------------
# Kernel
# ----------------------------------------------------------------------------
def _logreg_kernel(x_ref, w_ref, b_ref, probs_ref, acc_ref):
    """One (batch-tile, K-tile) grid step: accumulate X@W, finalize softmax."""
    k = pl.program_id(1)

    @pl.when(k == 0)
    def _():
        acc_ref[...] = jnp.zeros_like(acc_ref)

    # MXU matmul with f32 accumulation.
    acc_ref[...] += jnp.dot(
        x_ref[...], w_ref[...], preferred_element_type=jnp.float32
    )

    @pl.when(k == pl.num_programs(1) - 1)
    def _():
        logits = acc_ref[...] + b_ref[...]
        # Numerically stable row softmax over the 128-lane-padded class dim.
        m = jnp.max(logits, axis=1, keepdims=True)
        e = jnp.exp(logits - m)
        denom = jnp.sum(e, axis=1, keepdims=True)
        # Exact division (NOT pl.reciprocal(approx=True)) so each row sums to
        # 1 to f32 precision and results match torch.softmax.
        probs_ref[...] = (e / denom).astype(probs_ref.dtype)


# ----------------------------------------------------------------------------
# Tiling / budget helpers
# ----------------------------------------------------------------------------
def _round_up(x, m):
    return ((x + m - 1) // m) * m


def _vmem_budget_bytes():
    """Generation-aware VMEM budget shared by tile sizing and vmem_limit_bytes."""
    try:
        cap = int(pltpu.get_tpu_info().vmem_capacity_bytes)
    except Exception:
        cap = 64 * 1024 * 1024  # conservative (v7x-sized) default
    # ~75% of physical, with headroom: ~48 MiB on v7x, ~96 MiB on v5e/v6e.
    return int(min(cap * 3 // 4, 96 * 1024 * 1024))


def _choose_tile_k(d):
    """Contraction tile.  Keep the full D resident unless D is large; K tiles
    must be lane-aligned (multiple of 128) and divide D exactly so the
    accumulation never sees out-of-bounds garbage."""
    if d <= 2048:
        return d
    for tk in (1024, 768, 512, 384, 256, 128):
        if d % tk == 0:
            return tk
    return d  # no clean divisor -> keep the full contraction resident


def _choose_tile_n(n, tile_k, c_pad, k_tiles, budget_bytes):
    """Largest multiple-of-8 batch tile whose VMEM footprint fits the budget."""
    w_bufs = 1 if k_tiles == 1 else 2  # resident single-buffer vs. K-streamed
    resident = (w_bufs * tile_k * c_pad + c_pad) * 4  # W (+ bias)
    # Per batch row: double-buffered X slab + double-buffered output tile +
    # f32 accumulator + ~3x C_pad softmax temporaries (logits / e / probs).
    per_row = 4 * (2 * tile_k + 2 * c_pad + c_pad + 3 * c_pad)
    avail = max(budget_bytes - resident, per_row * 8)
    tile = (avail // per_row) // 8 * 8
    tile = int(max(8, min(tile, 4096)))
    # Never bigger than the (8-rounded) batch.
    tile = min(tile, _round_up(n, 8))
    # Guarantee >= 2 grid steps when possible so v7x megacore uses both TCs.
    if n >= 16:
        tile = min(tile, _round_up(pl.cdiv(n, 2), 8))
    return tile


# ----------------------------------------------------------------------------
# Forward
# ----------------------------------------------------------------------------
def _pad_params(w, b, dtype=jnp.float32):
    """Pad the class dim to a full 128-lane width (lane-dense output stores).
    Zero W columns + a -1e30 bias make padded logits vanish under softmax."""
    D, C = w.shape
    assert b.shape == (C,)
    C_pad = _round_up(max(C, _LANE), _LANE)
    w_p = jnp.zeros((D, C_pad), dtype).at[:, :C].set(w.astype(dtype))
    b_p = jnp.full((1, C_pad), _NEG_BIG, dtype=jnp.float32).at[0, :C].set(
        b.astype(jnp.float32)
    )
    return w_p, b_p, C_pad


def _forward_padded(x, w_p, b_p, *, out_dtype=jnp.float32):
    """x: (N, D); w_p: (D, C_pad); b_p: (1, C_pad) -> probs (N, C_pad)."""
    N, D = x.shape
    D2, C_pad = w_p.shape
    assert D == D2 and b_p.shape == (1, C_pad) and C_pad % _LANE == 0

    x = x.astype(w_p.dtype)

    tile_k = _choose_tile_k(D)
    k_tiles = pl.cdiv(D, tile_k)  # tile_k divides D (or equals it)
    budget = _vmem_budget_bytes()
    tile_n = _choose_tile_n(N, tile_k, C_pad, k_tiles, budget)
    n_tiles = pl.cdiv(N, tile_n)  # ragged final block: writes are masked

    if k_tiles == 1:
        # Whole-array, single-buffered VMEM resident (half the footprint of a
        # default double-buffered pipeline buffer for a constant-index input).
        w_spec = pl.BlockSpec(memory_space=pltpu.MemorySpace.VMEM)
    else:
        # Large D: stream K tiles of W through the pipeline.
        w_spec = pl.BlockSpec((tile_k, C_pad), lambda i, k: (k, 0))
    b_spec = pl.BlockSpec(memory_space=pltpu.MemorySpace.VMEM)

    out = pl.pallas_call(
        _logreg_kernel,
        out_shape=jax.ShapeDtypeStruct((N, C_pad), out_dtype),
        grid_spec=pltpu.PrefetchScalarGridSpec(
            num_scalar_prefetch=0,
            grid=(n_tiles, k_tiles),
            in_specs=[
                # X: one (batch, K) tile per grid step (double-buffered)
                pl.BlockSpec((tile_n, tile_k), lambda i, k: (i, k)),
                w_spec,
                b_spec,
            ],
            # Output resident across the K (reduction) axis.
            out_specs=pl.BlockSpec((tile_n, C_pad), lambda i, k: (i, 0)),
            scratch_shapes=[pltpu.VMEM((tile_n, C_pad), jnp.float32)],
        ),
        compiler_params=pltpu.CompilerParams(
            # Batch tiles are independent (v7x megacore shards them); K is a
            # reduction axis -> arbitrary, last.
            dimension_semantics=("parallel", "arbitrary"),
            vmem_limit_bytes=budget,
        ),
    )(x, w_p, b_p)
    return out


class PTLogregPallas:
    """Pallas forward-pass equivalent of the PyTorch PTLogreg module.

    Padded parameters are built once at construction (hoisted out of the
    per-call path).  matmul_dtype=jnp.bfloat16 is an opt-in that halves X/W
    HBM traffic (bias add + softmax stay f32); the default f32 matches the
    PyTorch module's numerics.
    """

    def __init__(self, W, b, *, matmul_dtype=jnp.float32, out_dtype=jnp.float32):
        D, C = W.shape
        assert b.shape == (C,)
        self.D, self.C = D, C
        self.out_dtype = out_dtype
        self.w_p, self.b_p, self.C_pad = _pad_params(W, b, matmul_dtype)

    def forward(self, X):
        assert X.ndim == 2 and X.shape[1] == self.D
        out = _forward_padded(X, self.w_p, self.b_p, out_dtype=self.out_dtype)
        return out[:, : self.C]

    __call__ = forward


def pt_logreg_forward(x, w, b):
    """Functional one-shot wrapper: probs = softmax(x @ w + b, axis=1)."""
    w_p, b_p, _ = _pad_params(w, b)
    return _forward_padded(x, w_p, b_p)[:, : w.shape[1]]


# TODO(synk): PTLogreg.get_loss (one-hot cross-entropy) is not fused into the
# kernel; only the forward pass (probs) is implemented here.


if __name__ == "__main__":
    key = jax.random.PRNGKey(0)
    kx, kw, kb = jax.random.split(key, 3)

    # Small shapes consistent with the module: N datapoints of dim D, C classes.
    N, D, C = 8, 32, 16
    x = jax.random.normal(kx, (N, D), dtype=jnp.float32)
    W = jax.random.normal(kw, (D, C), dtype=jnp.float32)  # ~ torch.randn(D, C)
    b = jax.random.normal(kb, (C,), dtype=jnp.float32)    # ~ torch.randn(C)

    model = PTLogregPallas(W, b)
    probs = jax.block_until_ready(model(x))

    # Parity check against a high-precision plain-JAX reference.
    ref_logits = jnp.dot(x, W, precision=jax.lax.Precision.HIGHEST) + b
    ref = jax.nn.softmax(ref_logits, axis=1)
    assert probs.shape == (N, C)
    assert jnp.allclose(probs, ref, atol=1e-3, rtol=1e-3)
    assert jnp.allclose(jnp.sum(probs, axis=1), 1.0, atol=1e-4)

    # Functional wrapper path as well.
    probs2 = jax.block_until_ready(pt_logreg_forward(x, W, b))
    assert jnp.allclose(probs2, ref, atol=1e-3, rtol=1e-3)

    print("KERNEL_OK")
</pallas_src>

<mosaic_0001>
module attributes {stable_mosaic.version = 11 : i64} {
  func.func @_logreg_kernel(%arg0: i32, %arg1: i32, %arg2: memref<8x32xf32, #tpu.memory_space<vmem>>, %arg3: memref<32x128xf32, #tpu.memory_space<vmem>>, %arg4: memref<1x128xf32, #tpu.memory_space<vmem>>, %arg5: memref<8x128xf32, #tpu.memory_space<vmem>>, %arg6: memref<8x128xf32, #tpu.memory_space<vmem>>) attributes {dimension_semantics = [#tpu.dimension_semantics<parallel>, #tpu.dimension_semantics<arbitrary>], iteration_bounds = array<i64: 1, 1>, scalar_prefetch = 0 : i64, scratch_operands = 1 : i64, tpu.core_type = #tpu.core_type<tc>, window_params = [{transform_indices = @transform_0, window_bounds = array<i64: 8, 32>}, {pipeline_mode = #tpu.pipeline_mode<synchronous>, transform_indices = @transform_1, window_bounds = array<i64: 32, 128>}, {pipeline_mode = #tpu.pipeline_mode<synchronous>, transform_indices = @transform_2, window_bounds = array<i64: 1, 128>}, {transform_indices = @transform_3, window_bounds = array<i64: 8, 128>}]} {
    %c0_i32 = arith.constant 0 : i32
    %0 = arith.cmpi eq, %arg1, %c0_i32 : i32
    %1 = arith.extui %0 : i1 to i32
    %c0_i32_0 = arith.constant 0 : i32
    %2 = arith.cmpi ne, %1, %c0_i32_0 : i32
    scf.if %2 {
      %cst_10 = arith.constant 0.000000e+00 : f32
      %12 = vector.broadcast %cst_10 : f32 to vector<8x128xf32>
      %c0_11 = arith.constant 0 : index
      %c0_12 = arith.constant 0 : index
      %13 = vector.load %arg6[%c0_11, %c0_12] : memref<8x128xf32, #tpu.memory_space<vmem>>, vector<8x128xf32>
      tpu.vector_store %arg6[%c0_11, %c0_12], %12 {strides = array<i32>} : memref<8x128xf32, #tpu.memory_space<vmem>>, vector<8x128xf32>,
    } else {
    }
    %c0 = arith.constant 0 : index
    %c0_1 = arith.constant 0 : index
    %3 = vector.load %arg6[%c0, %c0_1] : memref<8x128xf32, #tpu.memory_space<vmem>>, vector<8x128xf32>
    %c0_2 = arith.constant 0 : index
    %c0_3 = arith.constant 0 : index
    %4 = vector.load %arg2[%c0_2, %c0_3] : memref<8x32xf32, #tpu.memory_space<vmem>>, vector<8x32xf32>
    %c0_4 = arith.constant 0 : index
    %c0_5 = arith.constant 0 : index
    %5 = vector.load %arg3[%c0_4, %c0_5] : memref<32x128xf32, #tpu.memory_space<vmem>>, vector<32x128xf32>
    %cst = arith.constant dense<0.000000e+00> : vector<8x128xf32>
    %6 = tpu.matmul %4, %5, %cst {dimension_numbers = #tpu.dot_dimension_numbers<[1], [0], [0], [1], [0, 0, 1, 1], [], []>} : vector<8x32xf32>, vector<32x128xf32>, vector<8x128xf32> -> vector<8x128xf32>
    %7 = arith.addf %3, %6 : vector<8x128xf32>
    %c0_6 = arith.constant 0 : index
    %c0_7 = arith.constant 0 : index
    %8 = vector.load %arg6[%c0_6, %c0_7] : memref<8x128xf32, #tpu.memory_space<vmem>>, vector<8x128xf32>
    tpu.vector_store %arg6[%c0_6, %c0_7], %7 {strides = array<i32>} : memref<8x128xf32, #tpu.memory_space<vmem>>, vector<8x128xf32>,
    %c0_i32_8 = arith.constant 0 : i32
    %9 = arith.cmpi eq, %arg1, %c0_i32_8 : i32
    %10 = arith.extui %9 : i1 to i32
    %c0_i32_9 = arith.constant 0 : i32
    %11 = arith.cmpi ne, %10, %c0_i32_9 : i32
    scf.if %11 {
      %c0_10 = arith.constant 0 : index
      %c0_11 = arith.constant 0 : index
      %12 = vector.load %arg6[%c0_10, %c0_11] : memref<8x128xf32, #tpu.memory_space<vmem>>, vector<8x128xf32>
      %c0_12 = arith.constant 0 : index
      %c0_13 = arith.constant 0 : index
      %13 = vector.load %arg4[%c0_12, %c0_13] : memref<1x128xf32, #tpu.memory_space<vmem>>, vector<1x128xf32>
      %14 = vector.broadcast %13 : vector<1x128xf32> to vector<8x128xf32>
      %15 = arith.addf %12, %14 : vector<8x128xf32>
      %cst_14 = arith.constant dense<0xFF800000> : vector<8xf32>
      %16 = vector.multi_reduction <maximumf>, %15, %cst_14 [1] : vector<8x128xf32> to vector<8xf32>
      %17 = vector.shape_cast %16 : vector<8xf32> to vector<8x1xf32>
      %18 = vector.broadcast %17 : vector<8x1xf32> to vector<8x128xf32>
      %19 = arith.subf %15, %18 : vector<8x128xf32>
      %20 = math.exp %19 : vector<8x128xf32>
      %cst_15 = arith.constant dense<0.000000e+00> : vector<8xf32>
      %21 = vector.multi_reduction <add>, %20, %cst_15 [1] : vector<8x128xf32> to vector<8xf32>
      %22 = vector.shape_cast %21 : vector<8xf32> to vector<8x1xf32>
      %23 = vector.broadcast %22 : vector<8x1xf32> to vector<8x128xf32>
      %24 = arith.divf %20, %23 : vector<8x128xf32>
      %c0_16 = arith.constant 0 : index
      %c0_17 = arith.constant 0 : index
      %25 = vector.load %arg5[%c0_16, %c0_17] : memref<8x128xf32, #tpu.memory_space<vmem>>, vector<8x128xf32>
      tpu.vector_store %arg5[%c0_16, %c0_17], %24 {strides = array<i32>} : memref<8x128xf32, #tpu.memory_space<vmem>>, vector<8x128xf32>,
    } else {
    }
    return
  }
  func.func @transform_0(%arg0: i32, %arg1: i32) -> (i32, i32) {
    %c0_i32 = arith.constant 0 : i32
    return %arg0, %arg1 : i32, i32
  }
  func.func @transform_1(%arg0: i32, %arg1: i32) -> (i32, i32) {
    %c0_i32 = arith.constant 0 : i32
    %c0_i32_0 = arith.constant 0 : i32
    %c0_i32_1 = arith.constant 0 : i32
    return %c0_i32, %c0_i32_0 : i32, i32
  }
  func.func @transform_2(%arg0: i32, %arg1: i32) -> (i32, i32) {
    %c0_i32 = arith.constant 0 : i32
    %c0_i32_0 = arith.constant 0 : i32
    %c0_i32_1 = arith.constant 0 : i32
    return %c0_i32, %c0_i32_0 : i32, i32
  }
  func.func @transform_3(%arg0: i32, %arg1: i32) -> (i32, i32) {
    %c0_i32 = arith.constant 0 : i32
    %c0_i32_0 = arith.constant 0 : i32
    return %arg0, %c0_i32 : i32, i32
  }
}

</mosaic_0001>

<bundles_post_ra>
// kernel: tpu_custom_call.1
= control target key start
LH: loop header
LB: loop body
LE: loop exit
PB: predicated region body
PF: predicated region fallthrough
CT: control target
= control target key end

     0   :  { %8 = vsyncpa [#allocation4], 0  ;;  %s258_s0 = inlined_call_operand.hbm [shape: f32[8,32], index: 0, kind: input, shape index: {}]   ;;  %s259_s1 = inlined_call_operand.hbm [shape: f32[32,128], index: 1, kind: input, shape index: {}]   ;;  %s260_s2 = inlined_call_operand.vmem [shape: f32[1,128], index: 2, kind: input, shape index: {}]   ;;  %s261_s3 = inlined_call_operand.hbm [shape: f32[8,128], index: 3, kind: output, shape index: {}]  }
   0x1   :  { %9 = vsyncpa [#allocation7], 0 }
   0x2   :  { %10 = vsyncpa [#allocation5], 0  ;;  %s16_s14 = sshll.u32 %s258_s0, 4  ;;  %s221_s15 = smov [#allocation3]   ;;  %s17_s14 = int_to_ptr.hbm [resolvable:$true] %s16_s14 }
   0x3   :  { %s18_s16 = sshll.u32 %s221_s15, 4  ;;  %s26_s19 = sshll.u32 %s259_s1, 4  ;;  %s19_s16 = int_to_ptr.vmem [resolvable:$true] %s18_s16  ;;  %s27_s19 = int_to_ptr.hbm [resolvable:$true] %s26_s19 }
   0x4   :  { %21 = dma.hbm_to_vmem [thread:$0]  %s17_s14, 128, %s19_s16, [#allocation4]  }
   0x5   :  { %s222_s20 = smov [#allocation6]   ;;  %s223_s22 = smov 128  }
   0x6   :  { %s28_s21 = sshll.u32 %s222_s20, 4  ;;  %s224_s23 = smov 8   ;;  %s29_s21 = int_to_ptr.vmem [resolvable:$true] %s28_s21 }
   0x7   :  { %34 = dma.hbm_to_vmem [thread:$0]  %s27_s19, 512, %s29_s21, [#allocation7], %s223_s22, %s223_s22, %s224_s23  }
   0x8   :  { %215 = dma.done.wait [#allocation4], 128  }
   0x9   :  { %216 = vsyncadd [#allocation4], 4294967168 }
   0xa   :  { %217 = dma.done.wait [#allocation7], 512  }
   0xb   :  { %218 = vsyncadd [#allocation7], 4294966784  ;;  %v55_v0 = vld [vmem:[#allocation6 + $0x18] sm:$0xff]  ;;  %v54_v1 = vld [vmem:[#allocation6 + $0x10] sm:$0xff]  ;;  %vm56_vm0 = vcmask 261120   ;;  %s121_s27 = sshll.u32 %s261_s3, 4  ;;  %s122_s27 = int_to_ptr.hbm [resolvable:$true] %s121_s27 }
   0xc   :  { %72 = vmatpush.msra.mxu0 %v55_v0  ;;  %v53_v2 = vld [vmem:[#allocation6 + $0x8] sm:$0xff]  ;;  %v52_v3 = vld [vmem:[#allocation6] sm:$0xff]  ;;  %v51_v4 = vld [vmem:[#allocation3] sm:$0xff] }
   0xd   :  { %v138_v5 = vld [vmem:[%s260_s2] ss:$0 sm:$0xff]  ;;  %s225_s2 = smov [#allocation8]  }
   0xe   :  { %73 = vmatpush.msra.mxu0 %v54_v1  ;;  %s119_s24 = sshll.u32 %s225_s2, 4  ;;  %s120_s24 = int_to_ptr.vmem [resolvable:$true] %s119_s24 }
  0x10   :  { %74 = vmatpush.msra.mxu0 %v53_v2 }
  0x12   :  { %75 = vmatpush.msra.mxu0 %v52_v3 }
  0x13   :  { %132 = vmatmul.msk.f32.vlgmr.msra.gmra.mxu0 %vm56_vm0, %v51_v4 }
  0x90   :  { %v77_v6 = vpop.f32.mrf.mxu0 }
  0x91   :  { %v90_v7 = vadd.f32 %v138_v5, %v77_v6 }
  0x93   :  { %91 = vmax.xlane.f32.xlu0 %v90_v7 }
 0x106   :  { %v92_v8 = vpop.xlane.xlu0 %91 }
 0x107   :  { %v93_v9 = vsub.f32 %v90_v7, %v92_v8 }
 0x109   :  { %v94_v10 = vmul.f32 1.442695, %v93_v9 }
 0x10b   :  { %139 = vpow2.f32 %v94_v10 }
 0x111   :  { %v140_v11 = vpop.eup %139 }
 0x112   :  { %96 = vadd.xlane.f32.xlu0 %v140_v11 }
 0x185   :  { %v97_v12 = vpop.xlane.xlu0 %96 }
 0x186   :  { %141 = vrcp.f32 %v97_v12  ;;  %v109_v16 = vand.u32 2147483648, %v97_v12  ;;  %v107_v18 = vand.u32 2147483647, %v97_v12  ;;  %vm103_vm2 = vweird.f32 %v97_v12 }
 0x188   :  { %v110_v20 = vor.u32 1.1754944e-38, %v109_v16  ;;  %vm108_vm4 = vcmp.eq.f32.partialorder %v107_v18, 8.507059e+37 }
 0x18c   :  { %v142_v13 = vpop.eup %141 }
 0x18d   :  { %v99_v14 = vmul.f32 %v142_v13, %v97_v12  ;;  %vm104_vm1 = vweird.f32 %v142_v13 }
 0x18e   :  { %vm105_vm3 = vmor %vm103_vm2, %vm104_vm1 }
 0x18f   :  { %v100_v15 = vsub.f32 1.0, %v99_v14 }
 0x191   :  { %v101_v17 = vmul.f32 %v142_v13, %v100_v15 }
 0x193   :  { %v102_v19 = vadd.f32 %v142_v13, %v101_v17 }
 0x195   :  { %v106_v21 = vsel %vm105_vm3, %v142_v13, %v102_v19 }
 0x196   :  { %v111_v22 = vsel %vm108_vm4, %v110_v20, %v106_v21 }
 0x197   :  { %v112_v23 = vmul.f32 %v140_v11, %v111_v22 }
 0x199   :  { %113 = vst [vmem:[#allocation8] sm:$0xff] %v112_v23 }
 0x19a   :  { %124 = dma.vmem_to_hbm [thread:$0]  %s120_s24, 128, %s122_s27, [#allocation5]  }
 0x19b   :  { %219 = dma.done.wait [#allocation5], 128  }
 0x19c   :  { %220 = vsyncadd [#allocation5], 4294967168 }
 0x19d   :  { %129 = vsyncpa [#allocation4], 1 }
 0x19e   :  { %130 = vsyncpa [#allocation7], 1 }
 0x19f   :  { %131 = vsyncpa [#allocation5], 1 }

</bundles_post_ra>
